<compile_context>
chip_gen: v7x
topology: tpu7x:2x2x1
jax: 0.10.0
libtpu: 0.0.40
codegen_flags: <defaults>
</compile_context>

<pallas_src>
import functools

import jax
import jax.numpy as jnp
from jax.experimental import pallas as pl
from jax.experimental.pallas import tpu as pltpu

NEG_SLOPE = 0.01  # F.leaky_relu default negative_slope


def _conv_leaky_kernel(x_ref, w_ref, o_ref, acc_ref, *, kh, kw, row_w, m):
    """One image: fused im2col conv + leaky_relu.

    x_ref:   (R, C_pad)            flattened-spatial image rows (+ zero tail)
    w_ref:   (KH*KW, C_pad, O_pad) per-tap weight matrices
    o_ref:   (M, O_pad)            M = H_out * W (full-width rows)
    acc_ref: (M, O_pad) f32        VMEM accumulator
    """
    for t in range(kh * kw):
        i, j = divmod(t, kw)
        # Shifted view of the image rows for kernel tap (i, j): static offset.
        a = x_ref[pl.ds(i * row_w + j, m), :]                  # (M, C_pad)
        p = jnp.dot(a, w_ref[t], preferred_element_type=jnp.float32)
        if t == 0:
            acc_ref[...] = p
        else:
            acc_ref[...] += p
    acc = acc_ref[...]
    o_ref[...] = jnp.where(acc >= 0.0, acc, NEG_SLOPE * acc).astype(o_ref.dtype)


def _round_up(v, mult):
    return (v + mult - 1) // mult * mult


@jax.jit
def basic_conv2d(x, weight):
    """BasicConv2d forward: conv2d(bias=False, stride=1, padding=0) + leaky_relu.

    x:      (N, C, H, W)   float32
    weight: (O, C, KH, KW) float32
    returns (N, O, H_out, W_out) float32
    """
    n, c, h, w = x.shape
    o_ch, _, kh, kw = weight.shape
    h_out, w_out = h - kh + 1, w - kw + 1

    c_pad = _round_up(c, 8)                   # sublane-align the contraction dim
    o_pad = _round_up(max(o_ch, 128), 128)    # lane-dense output stores
    m = h_out * w                             # full-width output rows per image
    r = _round_up(h * w + kw - 1, 8)          # image rows + shift slack

    # NCHW -> channels-last flattened rows (N, R, C_pad); single cheap pass.
    x_rows = x.transpose(0, 2, 3, 1).reshape(n, h * w, c)
    x_rows = jnp.pad(x_rows, ((0, 0), (0, r - h * w), (0, c_pad - c)))

    # (O, C, KH, KW) -> (KH*KW, C_pad, O_pad), zero-padded channels/outputs.
    w_taps = weight.transpose(2, 3, 1, 0).reshape(kh * kw, c, o_ch)
    w_taps = jnp.pad(w_taps, ((0, 0), (0, c_pad - c), (0, o_pad - o_ch)))

    kernel = functools.partial(_conv_leaky_kernel, kh=kh, kw=kw, row_w=w, m=m)

    out = pl.pallas_call(
        kernel,
        out_shape=jax.ShapeDtypeStruct((n, m, o_pad), x.dtype),
        grid_spec=pltpu.PrefetchScalarGridSpec(
            num_scalar_prefetch=0,
            grid=(n,),
            in_specs=[
                pl.BlockSpec((None, r, c_pad), lambda b: (b, 0, 0)),
                pl.BlockSpec((kh * kw, c_pad, o_pad), lambda b: (0, 0, 0)),
            ],
            out_specs=pl.BlockSpec((None, m, o_pad), lambda b: (b, 0, 0)),
            scratch_shapes=[pltpu.VMEM((m, o_pad), jnp.float32)],
        ),
        compiler_params=pltpu.CompilerParams(
            dimension_semantics=("parallel",)),
    )(x_rows, w_taps)

    # (N, H_out*W, O_pad) -> drop garbage right-edge columns & padded channels.
    out = out.reshape(n, h_out, w, o_pad)[:, :, :w_out, :o_ch]
    # TODO(synk): keep channels-last end-to-end if the surrounding model can
    # consume it; this transpose only exists to match PyTorch's NCHW output.
    return out.transpose(0, 3, 1, 2)


def _reference(x, weight):
    y = jax.lax.conv_general_dilated(
        x, weight, window_strides=(1, 1), padding="VALID",
        dimension_numbers=("NCHW", "OIHW", "NCHW"))
    return jnp.where(y >= 0, y, NEG_SLOPE * y)


if __name__ == "__main__":
    key = jax.random.PRNGKey(0)
    k_x, k_w = jax.random.split(key)

    # Small shapes consistent with the module: N=2, C_in=4, H=W=16,
    # C_out=8, kernel_size=3 (default stride=1, padding=0).
    N, C_IN, H, W = 2, 4, 16, 16
    C_OUT, KSIZE = 8, 3

    x = jax.random.normal(k_x, (N, C_IN, H, W), dtype=jnp.float32)
    # Deterministic Kaiming-uniform-ish init (synthetic, not a checkpoint).
    fan_in = C_IN * KSIZE * KSIZE
    bound = 1.0 / (fan_in ** 0.5)
    weight = jax.random.uniform(
        k_w, (C_OUT, C_IN, KSIZE, KSIZE),
        minval=-bound, maxval=bound, dtype=jnp.float32)

    out = jax.block_until_ready(basic_conv2d(x, weight))
    ref = jax.block_until_ready(_reference(x, weight))

    assert out.shape == (N, C_OUT, H - KSIZE + 1, W - KSIZE + 1), out.shape
    assert jnp.allclose(out, ref, atol=1e-5, rtol=1e-5), "mismatch vs reference"

    print("KERNEL_OK")
</pallas_src>

<mosaic_0001>
module attributes {stable_mosaic.version = 11 : i64} {
  func.func @_conv_leaky_kernel(%arg0: i32, %arg1: memref<1x264x8xf32, #tpu.memory_space<vmem>>, %arg2: memref<9x8x128xf32, #tpu.memory_space<vmem>>, %arg3: memref<1x224x128xf32, #tpu.memory_space<vmem>>, %arg4: memref<224x128xf32, #tpu.memory_space<vmem>>) attributes {dimension_semantics = [#tpu.dimension_semantics<parallel>], iteration_bounds = array<i64: 2>, scalar_prefetch = 0 : i64, scratch_operands = 1 : i64, tpu.core_type = #tpu.core_type<tc>, window_params = [{transform_indices = @transform_0, window_bounds = array<i64: 1, 264, 8>}, {pipeline_mode = #tpu.pipeline_mode<synchronous>, transform_indices = @transform_1, window_bounds = array<i64: 9, 8, 128>}, {transform_indices = @transform_2, window_bounds = array<i64: 1, 224, 128>}]} {
    %c0 = arith.constant 0 : index
    %c0_0 = arith.constant 0 : index
    %c0_1 = arith.constant 0 : index
    %0 = vector.load %arg1[%c0, %c0_0, %c0_1] : memref<1x264x8xf32, #tpu.memory_space<vmem>>, vector<1x224x8xf32>
    %1 = vector.shape_cast %0 : vector<1x224x8xf32> to vector<224x8xf32>
    %c0_2 = arith.constant 0 : index
    %c0_3 = arith.constant 0 : index
    %c0_4 = arith.constant 0 : index
    %2 = vector.load %arg2[%c0_2, %c0_3, %c0_4] : memref<9x8x128xf32, #tpu.memory_space<vmem>>, vector<1x8x128xf32>
    %3 = vector.shape_cast %2 : vector<1x8x128xf32> to vector<8x128xf32>
    %cst = arith.constant dense<0.000000e+00> : vector<224x128xf32>
    %4 = tpu.matmul %1, %3, %cst {dimension_numbers = #tpu.dot_dimension_numbers<[1], [0], [0], [1], [0, 0, 1, 1], [], []>} : vector<224x8xf32>, vector<8x128xf32>, vector<224x128xf32> -> vector<224x128xf32>
    %c0_5 = arith.constant 0 : index
    %c0_6 = arith.constant 0 : index
    %5 = vector.load %arg4[%c0_5, %c0_6] : memref<224x128xf32, #tpu.memory_space<vmem>>, vector<224x128xf32>
    tpu.vector_store %arg4[%c0_5, %c0_6], %4 {strides = array<i32>} : memref<224x128xf32, #tpu.memory_space<vmem>>, vector<224x128xf32>,
    %c0_7 = arith.constant 0 : index
    %c1 = arith.constant 1 : index
    %c0_8 = arith.constant 0 : index
    %6 = vector.load %arg1[%c0_7, %c1, %c0_8] : memref<1x264x8xf32, #tpu.memory_space<vmem>>, vector<1x224x8xf32>
    %7 = vector.shape_cast %6 : vector<1x224x8xf32> to vector<224x8xf32>
    %c1_9 = arith.constant 1 : index
    %c0_10 = arith.constant 0 : index
    %c0_11 = arith.constant 0 : index
    %8 = vector.load %arg2[%c1_9, %c0_10, %c0_11] : memref<9x8x128xf32, #tpu.memory_space<vmem>>, vector<1x8x128xf32>
    %9 = vector.shape_cast %8 : vector<1x8x128xf32> to vector<8x128xf32>
    %cst_12 = arith.constant dense<0.000000e+00> : vector<224x128xf32>
    %10 = tpu.matmul %7, %9, %cst_12 {dimension_numbers = #tpu.dot_dimension_numbers<[1], [0], [0], [1], [0, 0, 1, 1], [], []>} : vector<224x8xf32>, vector<8x128xf32>, vector<224x128xf32> -> vector<224x128xf32>
    %c0_13 = arith.constant 0 : index
    %c0_14 = arith.constant 0 : index
    %11 = vector.load %arg4[%c0_13, %c0_14] : memref<224x128xf32, #tpu.memory_space<vmem>>, vector<224x128xf32>
    %12 = arith.addf %11, %10 : vector<224x128xf32>
    %c0_15 = arith.constant 0 : index
    %c0_16 = arith.constant 0 : index
    %13 = vector.load %arg4[%c0_15, %c0_16] : memref<224x128xf32, #tpu.memory_space<vmem>>, vector<224x128xf32>
    tpu.vector_store %arg4[%c0_15, %c0_16], %12 {strides = array<i32>} : memref<224x128xf32, #tpu.memory_space<vmem>>, vector<224x128xf32>,
    %c0_17 = arith.constant 0 : index
    %c2 = arith.constant 2 : index
    %c0_18 = arith.constant 0 : index
    %14 = vector.load %arg1[%c0_17, %c2, %c0_18] : memref<1x264x8xf32, #tpu.memory_space<vmem>>, vector<1x224x8xf32>
    %15 = vector.shape_cast %14 : vector<1x224x8xf32> to vector<224x8xf32>
    %c2_19 = arith.constant 2 : index
    %c0_20 = arith.constant 0 : index
    %c0_21 = arith.constant 0 : index
    %16 = vector.load %arg2[%c2_19, %c0_20, %c0_21] : memref<9x8x128xf32, #tpu.memory_space<vmem>>, vector<1x8x128xf32>
    %17 = vector.shape_cast %16 : vector<1x8x128xf32> to vector<8x128xf32>
    %cst_22 = arith.constant dense<0.000000e+00> : vector<224x128xf32>
    %18 = tpu.matmul %15, %17, %cst_22 {dimension_numbers = #tpu.dot_dimension_numbers<[1], [0], [0], [1], [0, 0, 1, 1], [], []>} : vector<224x8xf32>, vector<8x128xf32>, vector<224x128xf32> -> vector<224x128xf32>
    %c0_23 = arith.constant 0 : index
    %c0_24 = arith.constant 0 : index
    %19 = vector.load %arg4[%c0_23, %c0_24] : memref<224x128xf32, #tpu.memory_space<vmem>>, vector<224x128xf32>
    %20 = arith.addf %19, %18 : vector<224x128xf32>
    %c0_25 = arith.constant 0 : index
    %c0_26 = arith.constant 0 : index
    %21 = vector.load %arg4[%c0_25, %c0_26] : memref<224x128xf32, #tpu.memory_space<vmem>>, vector<224x128xf32>
    tpu.vector_store %arg4[%c0_25, %c0_26], %20 {strides = array<i32>} : memref<224x128xf32, #tpu.memory_space<vmem>>, vector<224x128xf32>,
    %c0_27 = arith.constant 0 : index
    %c16 = arith.constant 16 : index
    %c0_28 = arith.constant 0 : index
    %22 = vector.load %arg1[%c0_27, %c16, %c0_28] : memref<1x264x8xf32, #tpu.memory_space<vmem>>, vector<1x224x8xf32>
    %23 = vector.shape_cast %22 : vector<1x224x8xf32> to vector<224x8xf32>
    %c3 = arith.constant 3 : index
    %c0_29 = arith.constant 0 : index
    %c0_30 = arith.constant 0 : index
    %24 = vector.load %arg2[%c3, %c0_29, %c0_30] : memref<9x8x128xf32, #tpu.memory_space<vmem>>, vector<1x8x128xf32>
    %25 = vector.shape_cast %24 : vector<1x8x128xf32> to vector<8x128xf32>
    %cst_31 = arith.constant dense<0.000000e+00> : vector<224x128xf32>
    %26 = tpu.matmul %23, %25, %cst_31 {dimension_numbers = #tpu.dot_dimension_numbers<[1], [0], [0], [1], [0, 0, 1, 1], [], []>} : vector<224x8xf32>, vector<8x128xf32>, vector<224x128xf32> -> vector<224x128xf32>
    %c0_32 = arith.constant 0 : index
    %c0_33 = arith.constant 0 : index
    %27 = vector.load %arg4[%c0_32, %c0_33] : memref<224x128xf32, #tpu.memory_space<vmem>>, vector<224x128xf32>
    %28 = arith.addf %27, %26 : vector<224x128xf32>
    %c0_34 = arith.constant 0 : index
    %c0_35 = arith.constant 0 : index
    %29 = vector.load %arg4[%c0_34, %c0_35] : memref<224x128xf32, #tpu.memory_space<vmem>>, vector<224x128xf32>
    tpu.vector_store %arg4[%c0_34, %c0_35], %28 {strides = array<i32>} : memref<224x128xf32, #tpu.memory_space<vmem>>, vector<224x128xf32>,
    %c0_36 = arith.constant 0 : index
    %c17 = arith.constant 17 : index
    %c0_37 = arith.constant 0 : index
    %30 = vector.load %arg1[%c0_36, %c17, %c0_37] : memref<1x264x8xf32, #tpu.memory_space<vmem>>, vector<1x224x8xf32>
    %31 = vector.shape_cast %30 : vector<1x224x8xf32> to vector<224x8xf32>
    %c4 = arith.constant 4 : index
    %c0_38 = arith.constant 0 : index
    %c0_39 = arith.constant 0 : index
    %32 = vector.load %arg2[%c4, %c0_38, %c0_39] : memref<9x8x128xf32, #tpu.memory_space<vmem>>, vector<1x8x128xf32>
    %33 = vector.shape_cast %32 : vector<1x8x128xf32> to vector<8x128xf32>
    %cst_40 = arith.constant dense<0.000000e+00> : vector<224x128xf32>
    %34 = tpu.matmul %31, %33, %cst_40 {dimension_numbers = #tpu.dot_dimension_numbers<[1], [0], [0], [1], [0, 0, 1, 1], [], []>} : vector<224x8xf32>, vector<8x128xf32>, vector<224x128xf32> -> vector<224x128xf32>
    %c0_41 = arith.constant 0 : index
    %c0_42 = arith.constant 0 : index
    %35 = vector.load %arg4[%c0_41, %c0_42] : memref<224x128xf32, #tpu.memory_space<vmem>>, vector<224x128xf32>
    %36 = arith.addf %35, %34 : vector<224x128xf32>
    %c0_43 = arith.constant 0 : index
    %c0_44 = arith.constant 0 : index
    %37 = vector.load %arg4[%c0_43, %c0_44] : memref<224x128xf32, #tpu.memory_space<vmem>>, vector<224x128xf32>
    tpu.vector_store %arg4[%c0_43, %c0_44], %36 {strides = array<i32>} : memref<224x128xf32, #tpu.memory_space<vmem>>, vector<224x128xf32>,
    %c0_45 = arith.constant 0 : index
    %c18 = arith.constant 18 : index
    %c0_46 = arith.constant 0 : index
    %38 = vector.load %arg1[%c0_45, %c18, %c0_46] : memref<1x264x8xf32, #tpu.memory_space<vmem>>, vector<1x224x8xf32>
    %39 = vector.shape_cast %38 : vector<1x224x8xf32> to vector<224x8xf32>
    %c5 = arith.constant 5 : index
    %c0_47 = arith.constant 0 : index
    %c0_48 = arith.constant 0 : index
    %40 = vector.load %arg2[%c5, %c0_47, %c0_48] : memref<9x8x128xf32, #tpu.memory_space<vmem>>, vector<1x8x128xf32>
    %41 = vector.shape_cast %40 : vector<1x8x128xf32> to vector<8x128xf32>
    %cst_49 = arith.constant dense<0.000000e+00> : vector<224x128xf32>
    %42 = tpu.matmul %39, %41, %cst_49 {dimension_numbers = #tpu.dot_dimension_numbers<[1], [0], [0], [1], [0, 0, 1, 1], [], []>} : vector<224x8xf32>, vector<8x128xf32>, vector<224x128xf32> -> vector<224x128xf32>
    %c0_50 = arith.constant 0 : index
    %c0_51 = arith.constant 0 : index
    %43 = vector.load %arg4[%c0_50, %c0_51] : memref<224x128xf32, #tpu.memory_space<vmem>>, vector<224x128xf32>
    %44 = arith.addf %43, %42 : vector<224x128xf32>
    %c0_52 = arith.constant 0 : index
    %c0_53 = arith.constant 0 : index
    %45 = vector.load %arg4[%c0_52, %c0_53] : memref<224x128xf32, #tpu.memory_space<vmem>>, vector<224x128xf32>
    tpu.vector_store %arg4[%c0_52, %c0_53], %44 {strides = array<i32>} : memref<224x128xf32, #tpu.memory_space<vmem>>, vector<224x128xf32>,
    %c0_54 = arith.constant 0 : index
    %c32 = arith.constant 32 : index
    %c0_55 = arith.constant 0 : index
    %46 = vector.load %arg1[%c0_54, %c32, %c0_55] : memref<1x264x8xf32, #tpu.memory_space<vmem>>, vector<1x224x8xf32>
    %47 = vector.shape_cast %46 : vector<1x224x8xf32> to vector<224x8xf32>
    %c6 = arith.constant 6 : index
    %c0_56 = arith.constant 0 : index
    %c0_57 = arith.constant 0 : index
    %48 = vector.load %arg2[%c6, %c0_56, %c0_57] : memref<9x8x128xf32, #tpu.memory_space<vmem>>, vector<1x8x128xf32>
    %49 = vector.shape_cast %48 : vector<1x8x128xf32> to vector<8x128xf32>
    %cst_58 = arith.constant dense<0.000000e+00> : vector<224x128xf32>
    %50 = tpu.matmul %47, %49, %cst_58 {dimension_numbers = #tpu.dot_dimension_numbers<[1], [0], [0], [1], [0, 0, 1, 1], [], []>} : vector<224x8xf32>, vector<8x128xf32>, vector<224x128xf32> -> vector<224x128xf32>
    %c0_59 = arith.constant 0 : index
    %c0_60 = arith.constant 0 : index
    %51 = vector.load %arg4[%c0_59, %c0_60] : memref<224x128xf32, #tpu.memory_space<vmem>>, vector<224x128xf32>
    %52 = arith.addf %51, %50 : vector<224x128xf32>
    %c0_61 = arith.constant 0 : index
    %c0_62 = arith.constant 0 : index
    %53 = vector.load %arg4[%c0_61, %c0_62] : memref<224x128xf32, #tpu.memory_space<vmem>>, vector<224x128xf32>
    tpu.vector_store %arg4[%c0_61, %c0_62], %52 {strides = array<i32>} : memref<224x128xf32, #tpu.memory_space<vmem>>, vector<224x128xf32>,
    %c0_63 = arith.constant 0 : index
    %c33 = arith.constant 33 : index
    %c0_64 = arith.constant 0 : index
    %54 = vector.load %arg1[%c0_63, %c33, %c0_64] : memref<1x264x8xf32, #tpu.memory_space<vmem>>, vector<1x224x8xf32>
    %55 = vector.shape_cast %54 : vector<1x224x8xf32> to vector<224x8xf32>
    %c7 = arith.constant 7 : index
    %c0_65 = arith.constant 0 : index
    %c0_66 = arith.constant 0 : index
    %56 = vector.load %arg2[%c7, %c0_65, %c0_66] : memref<9x8x128xf32, #tpu.memory_space<vmem>>, vector<1x8x128xf32>
    %57 = vector.shape_cast %56 : vector<1x8x128xf32> to vector<8x128xf32>
    %cst_67 = arith.constant dense<0.000000e+00> : vector<224x128xf32>
    %58 = tpu.matmul %55, %57, %cst_67 {dimension_numbers = #tpu.dot_dimension_numbers<[1], [0], [0], [1], [0, 0, 1, 1], [], []>} : vector<224x8xf32>, vector<8x128xf32>, vector<224x128xf32> -> vector<224x128xf32>
    %c0_68 = arith.constant 0 : index
    %c0_69 = arith.constant 0 : index
    %59 = vector.load %arg4[%c0_68, %c0_69] : memref<224x128xf32, #tpu.memory_space<vmem>>, vector<224x128xf32>
    %60 = arith.addf %59, %58 : vector<224x128xf32>
    %c0_70 = arith.constant 0 : index
    %c0_71 = arith.constant 0 : index
    %61 = vector.load %arg4[%c0_70, %c0_71] : memref<224x128xf32, #tpu.memory_space<vmem>>, vector<224x128xf32>
    tpu.vector_store %arg4[%c0_70, %c0_71], %60 {strides = array<i32>} : memref<224x128xf32, #tpu.memory_space<vmem>>, vector<224x128xf32>,
    %c0_72 = arith.constant 0 : index
    %c34 = arith.constant 34 : index
    %c0_73 = arith.constant 0 : index
    %62 = vector.load %arg1[%c0_72, %c34, %c0_73] : memref<1x264x8xf32, #tpu.memory_space<vmem>>, vector<1x224x8xf32>
    %63 = vector.shape_cast %62 : vector<1x224x8xf32> to vector<224x8xf32>
    %c8 = arith.constant 8 : index
    %c0_74 = arith.constant 0 : index
    %c0_75 = arith.constant 0 : index
    %64 = vector.load %arg2[%c8, %c0_74, %c0_75] : memref<9x8x128xf32, #tpu.memory_space<vmem>>, vector<1x8x128xf32>
    %65 = vector.shape_cast %64 : vector<1x8x128xf32> to vector<8x128xf32>
    %cst_76 = arith.constant dense<0.000000e+00> : vector<224x128xf32>
    %66 = tpu.matmul %63, %65, %cst_76 {dimension_numbers = #tpu.dot_dimension_numbers<[1], [0], [0], [1], [0, 0, 1, 1], [], []>} : vector<224x8xf32>, vector<8x128xf32>, vector<224x128xf32> -> vector<224x128xf32>
    %c0_77 = arith.constant 0 : index
    %c0_78 = arith.constant 0 : index
    %67 = vector.load %arg4[%c0_77, %c0_78] : memref<224x128xf32, #tpu.memory_space<vmem>>, vector<224x128xf32>
    %68 = arith.addf %67, %66 : vector<224x128xf32>
    %c0_79 = arith.constant 0 : index
    %c0_80 = arith.constant 0 : index
    %69 = vector.load %arg4[%c0_79, %c0_80] : memref<224x128xf32, #tpu.memory_space<vmem>>, vector<224x128xf32>
    tpu.vector_store %arg4[%c0_79, %c0_80], %68 {strides = array<i32>} : memref<224x128xf32, #tpu.memory_space<vmem>>, vector<224x128xf32>,
    %c0_81 = arith.constant 0 : index
    %c0_82 = arith.constant 0 : index
    %70 = vector.load %arg4[%c0_81, %c0_82] : memref<224x128xf32, #tpu.memory_space<vmem>>, vector<224x128xf32>
    %cst_83 = arith.constant 0.000000e+00 : f32
    %71 = vector.broadcast %cst_83 : f32 to vector<224x128xf32>
    %72 = arith.cmpf oge, %70, %71 : vector<224x128xf32>
    %cst_84 = arith.constant 0.00999999977 : f32
    %73 = vector.broadcast %cst_84 : f32 to vector<224x128xf32>
    %74 = arith.mulf %73, %70 : vector<224x128xf32>
    %75 = arith.select %72, %70, %74 : vector<224x128xi1>, vector<224x128xf32>
    %c0_85 = arith.constant 0 : index
    %c0_86 = arith.constant 0 : index
    %c0_87 = arith.constant 0 : index
    %76 = vector.load %arg3[%c0_85, %c0_86, %c0_87] : memref<1x224x128xf32, #tpu.memory_space<vmem>>, vector<1x224x128xf32>
    %77 = vector.shape_cast %76 : vector<1x224x128xf32> to vector<224x128xf32>
    %78 = vector.shape_cast %75 : vector<224x128xf32> to vector<1x224x128xf32>
    tpu.vector_store %arg3[%c0_85, %c0_86, %c0_87], %78 {strides = array<i32>} : memref<1x224x128xf32, #tpu.memory_space<vmem>>, vector<1x224x128xf32>,
    return
  }
  func.func @transform_0(%arg0: i32) -> (i32, i32, i32) {
    %c0_i32 = arith.constant 0 : i32
    %c0_i32_0 = arith.constant 0 : i32
    %c0_i32_1 = arith.constant 0 : i32
    return %arg0, %c0_i32, %c0_i32_0 : i32, i32, i32
  }
  func.func @transform_1(%arg0: i32) -> (i32, i32, i32) {
    %c0_i32 = arith.constant 0 : i32
    %c0_i32_0 = arith.constant 0 : i32
    %c0_i32_1 = arith.constant 0 : i32
    %c0_i32_2 = arith.constant 0 : i32
    return %c0_i32, %c0_i32_0, %c0_i32_1 : i32, i32, i32
  }
  func.func @transform_2(%arg0: i32) -> (i32, i32, i32) {
    %c0_i32 = arith.constant 0 : i32
    %c0_i32_0 = arith.constant 0 : i32
    %c0_i32_1 = arith.constant 0 : i32
    return %arg0, %c0_i32, %c0_i32_0 : i32, i32, i32
  }
}

</mosaic_0001>

<bundles_post_ra>
// kernel: basic_conv2d.1
= control target key start
LH: loop header
LB: loop body
LE: loop exit
PB: predicated region body
PF: predicated region fallthrough
CT: control target
= control target key end

     0   :  { %s5095_s9 = smov 0   ;;  %s5969_s0 = inlined_call_operand.vmem [shape: f32[2,264,8], index: 0, kind: input, shape index: {}]   ;;  %s5970_s1 = inlined_call_operand.vmem [shape: f32[9,8,128], index: 1, kind: input, shape index: {}]   ;;  %s5971_s2 = inlined_call_operand.vmem [shape: f32[2,224,128], index: 2, kind: output, shape index: {}]  }
   0x1 LB: > { %s3910_s10 = sadd.s32 4294967295, %s5078_s9   ;;  %p3914_p0 = scmp.ge.s32.totalorder %s5078_s9, 1  ;;  %s5078_s9 = sphi %s5095_s9, %s12_s9  }
   0x2   : > { %p112_p1 = scmp.lt.s32.totalorder %s5078_s9, 3 }
   0x4   : > { %p113_p2 = pnand %p3914_p0, %p112_p1 }
   0x6   : > { %116 = sbr.rel (%p113_p2) target bundleno = 488 (0x1e8), region = 28 }
   0xd   : > { %v172_v0 = vld [vmem:[%s5970_s1] sm:$0xff]  ;;  %p134_p3 = scmp.lt.s32.totalorder %s3910_s10, 1  ;;  %v3945_v2 = vld [vmem:[%s5970_s1 + $0x8] sm:$0xff]  ;;  %vm173_vm0 = vcmask 64512   ;;  %v5150_v10 = vld [vmem:[%s5970_s1 + $0x30] sm:$0xff] }
   0xe   : > { %v5109_v1 = vld [vmem:[%s5970_s1 + $0x20] sm:$0xff]  ;;  %4440 = vmatprep.subr.mxu1 %v172_v0  ;;  %v4061_v3 = vld [vmem:[%s5970_s1 + $0x28] sm:$0xff]  ;;  %v5155_v11 = vld [vmem:[%s5970_s1 + $0x10] sm:$0xff] }
   0xf   : > { %4616 = vmatprep.subr.mxu0 %v5109_v1  ;;  %4441 = vmatpush3.msra.mxu1 %v172_v0  ;;  %s6035_s10 = smov (!%p134_p3, %s3910_s10), 1  ;;  %v5298_v40 = vld [vmem:[%s5970_s1 + $0x38] sm:$0xff] }
  0x10   : > { %4617 = vmatpush3.msra.mxu0 %v5109_v1  ;;  %4484 = vmatprep.subr.mxu1 %v3945_v2  ;;  %s5062_s19 = smul.u32 264, %s6035_s10 }
  0x11   : > { %4660 = vmatprep.subr.mxu0 %v4061_v3  ;;  %s5063_s5 = smul.u32 224, %s6035_s10 }
  0x12   : > { %s5125_s22 = scalar_lea.vmem %s5969_s0, %s5062_s19 }
  0x13   : > { %v144_v4 = vld [vmem:[%s5125_s22] sm:$0xff]  ;;  %v5129_v5 = vld [vmem:[%s5125_s22 + $0x11] sm:$0xff]  ;;  %v145_v6 = vld [vmem:[%s5125_s22 + $0x8] sm:$0xff]  ;;  %s5932_s8 = scalar_lea.vmem %s5971_s2, %s5063_s5 }
  0x14   : > { %4442 = vmatprep.mubr.msk.f32.mxu1 %vm173_vm0, %v144_v4  ;;  %4618 = vmatprep.mubr.msk.f32.mxu0 %vm173_vm0, %v5129_v5  ;;  %v5136_v7 = vld [vmem:[%s5125_s22 + $0x19] sm:$0xff]  ;;  %v5139_v8 = vld [vmem:[%s5125_s22 + $0x10] sm:$0xff]  ;;  %v5142_v9 = vld [vmem:[%s5125_s22 + $0x21] sm:$0xff] }
  0x15   : > { %5996 = vst [vmem:[#allocation3_spill] sm:$0xff] %v5139_v8  ;;  %4443 = vmatmul.mubr.msk.f32.vlgmr.msra.gmra.mrb[0].mxu1 %vm173_vm0, %v145_v6  ;;  %4619 = vmatmul.mubr.msk.f32.vlgmr.msra.gmra.mrb[0].mxu0 %vm173_vm0, %v5136_v7  ;;  %v5158_v12 = vld [vmem:[%s5125_s22 + $0x18] sm:$0xff]  ;;  %v5161_v13 = vld [vmem:[%s5125_s22 + $0x29] sm:$0xff]  ;;  %v5168_v14 = vld [vmem:[%s5125_s22 + $0x20] sm:$0xff] }
  0x16   : > { %4485 = vmatpush3.msra.mxu1 %v3945_v2  ;;  %4661 = vmatpush3.msra.mxu0 %v4061_v3  ;;  %5997 = vst [vmem:[#allocation4_spill] sm:$0xff] %v5158_v12  ;;  %5998 = vst [vmem:[#allocation5_spill] sm:$0xff] %v5168_v14  ;;  %v5171_v15 = vld [vmem:[%s5125_s22 + $0x31] sm:$0xff]  ;;  %v5184_v16 = vld [vmem:[%s5125_s22 + $0x28] sm:$0xff] }
  0x17   : > { %4445 = vmatprep.mubr.msk.f32.mxu1 %vm173_vm0, %v5139_v8  ;;  %4621 = vmatprep.mubr.msk.f32.mxu0 %vm173_vm0, %v5142_v9  ;;  %v5187_v17 = vld [vmem:[%s5125_s22 + $0x39] sm:$0xff]  ;;  %v5190_v18 = vld [vmem:[%s5125_s22 + $0x30] sm:$0xff]  ;;  %v5193_v19 = vld [vmem:[%s5125_s22 + $0x41] sm:$0xff] }
  0x18   : > { %4704 = vmatprep.subr.mxu0 %v5150_v10  ;;  %4528 = vmatprep.subr.mxu1 %v5155_v11  ;;  %5999 = vst [vmem:[#allocation6_spill] sm:$0xff] %v5190_v18  ;;  %v5204_v20 = vld [vmem:[%s5125_s22 + $0x38] sm:$0xff]  ;;  %v5207_v21 = vld [vmem:[%s5125_s22 + $0x49] sm:$0xff]  ;;  %v5210_v22 = vld [vmem:[%s5125_s22 + $0x40] sm:$0xff] }
  0x19   : > { %4446 = vmatmul.mubr.msk.f32.gmra.mrb[2].mxu1 %vm173_vm0, %v5158_v12  ;;  %4622 = vmatmul.mubr.msk.f32.gmra.mrb[2].mxu0 %vm173_vm0, %v5161_v13  ;;  %6000 = vst [vmem:[#allocation7_spill] sm:$0xff] %v5204_v20  ;;  %6001 = vst [vmem:[#allocation8_spill] sm:$0xff] %v5210_v22  ;;  %v5213_v23 = vld [vmem:[%s5125_s22 + $0x51] sm:$0xff]  ;;  %v5224_v24 = vld [vmem:[%s5125_s22 + $0x48] sm:$0xff] }
  0x1a   : > { %4448 = vmatprep.mubr.msk.f32.mxu1 %vm173_vm0, %v5168_v14  ;;  %4624 = vmatprep.mubr.msk.f32.mxu0 %vm173_vm0, %v5171_v15  ;;  %6002 = vst [vmem:[#allocation9_spill] sm:$0xff] %v5224_v24  ;;  %v5227_v25 = vld [vmem:[%s5125_s22 + $0x59] sm:$0xff]  ;;  %v5230_v26 = vld [vmem:[%s5125_s22 + $0x50] sm:$0xff]  ;;  %v5233_v27 = vld [vmem:[%s5125_s22 + $0x61] sm:$0xff] }
  0x1b   : > { %6003 = vst [vmem:[#allocation10_spill] sm:$0xff] %v5230_v26  ;;  %v5244_v28 = vld [vmem:[%s5125_s22 + $0x58] sm:$0xff]  ;;  %v5247_v29 = vld [vmem:[%s5125_s22 + $0x69] sm:$0xff]  ;;  %v5250_v30 = vld [vmem:[%s5125_s22 + $0x60] sm:$0xff] }
  0x1c   : > { %6004 = vst [vmem:[#allocation11_spill] sm:$0xff] %v5244_v28  ;;  %6005 = vst [vmem:[#allocation12_spill] sm:$0xff] %v5250_v30  ;;  %v5253_v31 = vld [vmem:[%s5125_s22 + $0x71] sm:$0xff]  ;;  %v5264_v32 = vld [vmem:[%s5125_s22 + $0x68] sm:$0xff] }
  0x1d   : > { %4449 = vmatmul.mubr.msk.f32.gmra.mrb[4].mxu1 %vm173_vm0, %v5184_v16  ;;  %4625 = vmatmul.mubr.msk.f32.gmra.mrb[4].mxu0 %vm173_vm0, %v5187_v17  ;;  %6006 = vst [vmem:[#allocation13_spill] sm:$0xff] %v5264_v32  ;;  %v5267_v33 = vld [vmem:[%s5125_s22 + $0x79] sm:$0xff]  ;;  %v5270_v34 = vld [vmem:[%s5125_s22 + $0x70] sm:$0xff]  ;;  %v5293_v39 = vld [vmem:[%s5125_s22 + $0x22] sm:$0xff] }
  0x1e   : > { %4451 = vmatprep.mubr.msk.f32.mxu1 %vm173_vm0, %v5190_v18  ;;  %4627 = vmatprep.mubr.msk.f32.mxu0 %vm173_vm0, %v5193_v19  ;;  %v5273_v35 = vld [vmem:[%s5125_s22 + $0x12] sm:$0xff]  ;;  %v5287_v37 = vld [vmem:[%s5125_s22 + $0x1a] sm:$0xff]  ;;  %v5308_v41 = vld [vmem:[%s5125_s22 + $0x88] sm:$0xff] }
  0x1f   : > { %v5284_v36 = vld [vmem:[%s5125_s22 + $0x78] sm:$0xff]  ;;  %v5290_v38 = vld [vmem:[%s5125_s22 + $0x80] sm:$0xff]  ;;  %v5311_v42 = vld [vmem:[%s5125_s22 + $0x2a] sm:$0xff] }
  0x20   : > { %6007 = vst [vmem:[#allocation14_spill] sm:$0xff] %v5284_v36  ;;  %v5316_v43 = vld [vmem:[%s5125_s22 + $0x90] sm:$0xff]  ;;  %v5331_v45 = vld [vmem:[%s5125_s22 + $0x98] sm:$0xff]  ;;  %v5337_v47 = vld [vmem:[%s5125_s22 + $0xa0] sm:$0xff] }
  0x21   : > { %4452 = vmatmul.mubr.msk.f32.gmra.mrb[6].mxu1 %vm173_vm0, %v5204_v20  ;;  %4628 = vmatmul.mubr.msk.f32.gmra.mrb[6].mxu0 %vm173_vm0, %v5207_v21  ;;  %v5319_v44 = vld [vmem:[%s5125_s22 + $0x32] sm:$0xff]  ;;  %v5334_v46 = vld [vmem:[%s5125_s22 + $0x3a] sm:$0xff]  ;;  %v5340_v48 = vld [vmem:[%s5125_s22 + $0x42] sm:$0xff] }
  0x22   : > { %4454 = vmatprep.mubr.msk.f32.mxu1 %vm173_vm0, %v5210_v22  ;;  %4630 = vmatprep.mubr.msk.f32.mxu0 %vm173_vm0, %v5213_v23  ;;  %v5351_v49 = vld [vmem:[%s5125_s22 + $0xa8] sm:$0xff]  ;;  %v5357_v51 = vld [vmem:[%s5125_s22 + $0xb0] sm:$0xff]  ;;  %v5371_v53 = vld [vmem:[%s5125_s22 + $0xb8] sm:$0xff] }
  0x23   : > { %v5354_v50 = vld [vmem:[%s5125_s22 + $0x4a] sm:$0xff]  ;;  %v5360_v52 = vld [vmem:[%s5125_s22 + $0x52] sm:$0xff]  ;;  %v5374_v54 = vld [vmem:[%s5125_s22 + $0x5a] sm:$0xff] }
  0x24   : > { %v5377_v55 = vld [vmem:[%s5125_s22 + $0xc0] sm:$0xff]  ;;  %v5391_v57 = vld [vmem:[%s5125_s22 + $0xc8] sm:$0xff]  ;;  %v5397_v59 = vld [vmem:[%s5125_s22 + $0xd0] sm:$0xff] }
  0x25   : > { %4455 = vmatmul.mubr.msk.f32.gmra.mrb[8].mxu1 %vm173_vm0, %v5224_v24  ;;  %4631 = vmatmul.mubr.msk.f32.gmra.mrb[8].mxu0 %vm173_vm0, %v5227_v25  ;;  %v5380_v56 = vld [vmem:[%s5125_s22 + $0x62] sm:$0xff]  ;;  %v5394_v58 = vld [vmem:[%s5125_s22 + $0x6a] sm:$0xff]  ;;  %v5400_v60 = vld [vmem:[%s5125_s22 + $0x72] sm:$0xff] }
  0x26   : > { %4457 = vmatprep.mubr.msk.f32.mxu1 %vm173_vm0, %v5230_v26  ;;  %4633 = vmatprep.mubr.msk.f32.mxu0 %vm173_vm0, %v5233_v27  ;;  %v5411_v61 = vld [vmem:[%s5125_s22 + $0xd8] sm:$0xff]  ;;  %v491_v63 = vld [vmem:[%s5125_s22 + $0x1] sm:$0xff]  ;;  %v492_v2 = vld [vmem:[%s5125_s22 + $0x9] sm:$0xff] }
  0x27   : > { %v5414_v62 = vld [vmem:[%s5125_s22 + $0x7a] sm:$0xff]  ;;  %v5418_v0 = vld [vmem:[%s5125_s22 + $0x82] sm:$0xff]  ;;  %v5429_v3 = vld [vmem:[%s5125_s22 + $0x8a] sm:$0xff] }
  0x28   : > { %v5432_v4 = vld [vmem:[%s5125_s22 + $0x92] sm:$0xff]  ;;  %v5491_v12 = vld [vmem:[%s5125_s22 + $0xca] sm:$0xff] }
  0x29   : > { %4458 = vmatmul.mubr.msk.f32.gmra.mrb[10].mxu1 %vm173_vm0, %v5244_v28  ;;  %4634 = vmatmul.mubr.msk.f32.gmra.mrb[10].mxu0 %vm173_vm0, %v5247_v29  ;;  %v5437_v6 = vld [vmem:[%s5970_s1 + $0x18] sm:$0xff]  ;;  %6010 = vst [vmem:[#allocation17_spill] sm:$0xff] %v5491_v12 }
  0x2a   : > { %4460 = vmatprep.mubr.msk.f32.mxu1 %vm173_vm0, %v5250_v30  ;;  %4636 = vmatprep.mubr.msk.f32.mxu0 %vm173_vm0, %v5253_v31  ;;  %v5494_v8 = vld [vmem:[%s5125_s22 + $0xd2] sm:$0xff] }
  0x2d   : > { %4461 = vmatmul.mubr.msk.f32.gmra.mrb[12].mxu1 %vm173_vm0, %v5264_v32  ;;  %4637 = vmatmul.mubr.msk.f32.gmra.mrb[12].mxu0 %vm173_vm0, %v5267_v33 }
  0x2e   : > { %4463 = vmatprep.mubr.msk.f32.mxu1 %vm173_vm0, %v5270_v34  ;;  %4662 = vmatprep.mubr.msk.f32.mxu0 %vm173_vm0, %v5273_v35 }
  0x31   : > { %4464 = vmatmul.mubr.msk.f32.gmra.mrb[14].mxu1 %vm173_vm0, %v5284_v36  ;;  %4663 = vmatmul.mubr.msk.f32.vlgmr.msra.gmra.mrb[0].mxu0 %vm173_vm0, %v5287_v37 }
  0x32   : > { %4705 = vmatpush3.msra.mxu0 %v5150_v10  ;;  %4466 = vmatprep.mubr.msk.f32.mxu1 %vm173_vm0, %v5290_v38  ;;  %v5446_v10 = vld [vmem:[%s5125_s22 + $0x9a] sm:$0xff] }
  0x33   : > { %4665 = vmatprep.mubr.msk.f32.mxu0 %vm173_vm0, %v5293_v39  ;;  %4748 = vmatprep.subr.mxu0 %v5298_v40 }
  0x35   : > { %4467 = vmatmul.mubr.msk.f32.gmra.mrb[16].mxu1 %vm173_vm0, %v5308_v41  ;;  %4666 = vmatmul.mubr.msk.f32.gmra.mrb[2].mxu0 %vm173_vm0, %v5311_v42 }
  0x36   : > { %4469 = vmatprep.mubr.msk.f32.mxu1 %vm173_vm0, %v5316_v43  ;;  %4668 = vmatprep.mubr.msk.f32.mxu0 %vm173_vm0, %v5319_v44 }
  0x39   : > { %4470 = vmatmul.mubr.msk.f32.gmra.mrb[18].mxu1 %vm173_vm0, %v5331_v45  ;;  %4669 = vmatmul.mubr.msk.f32.gmra.mrb[4].mxu0 %vm173_vm0, %v5334_v46 }
  0x3a   : > { %4472 = vmatprep.mubr.msk.f32.mxu1 %vm173_vm0, %v5337_v47  ;;  %4671 = vmatprep.mubr.msk.f32.mxu0 %vm173_vm0, %v5340_v48 }
  0x3d   : > { %4473 = vmatmul.mubr.msk.f32.gmra.mrb[20].mxu1 %vm173_vm0, %v5351_v49  ;;  %4672 = vmatmul.mubr.msk.f32.gmra.mrb[6].mxu0 %vm173_vm0, %v5354_v50 }
  0x3e   : > { %4475 = vmatprep.mubr.msk.f32.mxu1 %vm173_vm0, %v5357_v51  ;;  %4674 = vmatprep.mubr.msk.f32.mxu0 %vm173_vm0, %v5360_v52 }
  0x41   : > { %4476 = vmatmul.mubr.msk.f32.gmra.mrb[22].mxu1 %vm173_vm0, %v5371_v53  ;;  %4675 = vmatmul.mubr.msk.f32.gmra.mrb[8].mxu0 %vm173_vm0, %v5374_v54 }
  0x42   : > { %4478 = vmatprep.mubr.msk.f32.mxu1 %vm173_vm0, %v5377_v55  ;;  %4677 = vmatprep.mubr.msk.f32.mxu0 %vm173_vm0, %v5380_v56 }
  0x45   : > { %4479 = vmatmul.mubr.msk.f32.gmra.mrb[24].mxu1 %vm173_vm0, %v5391_v57  ;;  %4678 = vmatmul.mubr.msk.f32.gmra.mrb[10].mxu0 %vm173_vm0, %v5394_v58 }
  0x46   : > { %4481 = vmatprep.mubr.msk.f32.mxu1 %vm173_vm0, %v5397_v59  ;;  %4680 = vmatprep.mubr.msk.f32.mxu0 %vm173_vm0, %v5400_v60 }
  0x49   : > { %4482 = vmatmul.mubr.msk.f32.gmra.mrb[26].mxu1 %vm173_vm0, %v5411_v61  ;;  %4681 = vmatmul.mubr.msk.f32.gmra.mrb[12].mxu0 %vm173_vm0, %v5414_v62 }
  0x4a   : > { %4486 = vmatprep.mubr.msk.f32.mxu1 %vm173_vm0, %v491_v63  ;;  %4683 = vmatprep.mubr.msk.f32.mxu0 %vm173_vm0, %v5418_v0  ;;  %v5451_v63 = vld [vmem:[%s5125_s22 + $0xa2] sm:$0xff] }
  0x4d   : > { %4487 = vmatmul.mubr.msk.f32.vlgmr.msra.gmra.mrb[0].mxu1 %vm173_vm0, %v492_v2  ;;  %4684 = vmatmul.mubr.msk.f32.gmra.mrb[14].mxu0 %vm173_vm0, %v5429_v3  ;;  %v5480_v2 = vld [vmem:[%s5125_s22 + $0xc2] sm:$0xff] }
  0x4e   : > { %4529 = vmatpush3.msra.mxu1 %v5155_v11  ;;  %4489 = vmatprep.mubr.msk.f32.mxu1 %vm173_vm0, %v5129_v5  ;;  %v5463_v5 = vld [vmem:[%s5125_s22 + $0xaa] sm:$0xff]  ;;  %v5466_v11 = vld [vmem:[%s5125_s22 + $0xb2] sm:$0xff]  ;;  %6009 = vst [vmem:[#allocation16_spill] sm:$0xff] %v5480_v2 }
  0x4f   : > { %4686 = vmatprep.mubr.msk.f32.mxu0 %vm173_vm0, %v5432_v4  ;;  %4572 = vmatprep.subr.mxu1 %v5437_v6 }
  0x51   : > { %4490 = vmatmul.mubr.msk.f32.gmra.mrb[2].mxu1 %vm173_vm0, %v5136_v7  ;;  %4687 = vmatmul.mubr.msk.f32.gmra.mrb[16].mxu0 %vm173_vm0, %v5446_v10  ;;  %v5477_v7 = vld [vmem:[%s5125_s22 + $0xba] sm:$0xff] }
  0x52   : > { %4492 = vmatprep.mubr.msk.f32.mxu1 %vm173_vm0, %v5142_v9  ;;  %4689 = vmatprep.mubr.msk.f32.mxu0 %vm173_vm0, %v5451_v63  ;;  %6008 = vst [vmem:[#allocation15_spill] sm:$0xff] %v5477_v7 }
  0x55   : > { %4493 = vmatmul.mubr.msk.f32.gmra.mrb[4].mxu1 %vm173_vm0, %v5161_v13  ;;  %4690 = vmatmul.mubr.msk.f32.gmra.mrb[18].mxu0 %vm173_vm0, %v5463_v5 }
  0x56   : > { %4495 = vmatprep.mubr.msk.f32.mxu1 %vm173_vm0, %v5171_v15  ;;  %4692 = vmatprep.mubr.msk.f32.mxu0 %vm173_vm0, %v5466_v11 }
  0x59   : > { %4496 = vmatmul.mubr.msk.f32.gmra.mrb[6].mxu1 %vm173_vm0, %v5187_v17  ;;  %4693 = vmatmul.mubr.msk.f32.gmra.mrb[20].mxu0 %vm173_vm0, %v5477_v7  ;;  %v5505_v7 = vld [vmem:[%s5125_s22 + $0xda] sm:$0xff] }
  0x5a   : > { %4498 = vmatprep.mubr.msk.f32.mxu1 %vm173_vm0, %v5193_v19  ;;  %4695 = vmatprep.mubr.msk.f32.mxu0 %vm173_vm0, %v5480_v2  ;;  %6011 = vst [vmem:[#allocation18_spill] sm:$0xff] %v5505_v7  ;;  %v5508_v2 = vld [vmem:[%s5125_s22 + $0xe2] sm:$0xff] }
  0x5b   : > { %6012 = vst [vmem:[#allocation19_spill] sm:$0xff] %v5508_v2 }
  0x5d   : > { %4499 = vmatmul.mubr.msk.f32.gmra.mrb[8].mxu1 %vm173_vm0, %v5207_v21  ;;  %4696 = vmatmul.mubr.msk.f32.gmra.mrb[22].mxu0 %vm173_vm0, %v5491_v12  ;;  %v5519_v12 = vld [vmem:[%s5125_s22 + $0xea] sm:$0xff] }
  0x5e   : > { %4501 = vmatprep.mubr.msk.f32.mxu1 %vm173_vm0, %v5213_v23  ;;  %4698 = vmatprep.mubr.msk.f32.mxu0 %vm173_vm0, %v5494_v8  ;;  %6013 = vst [vmem:[#allocation20_spill] sm:$0xff] %v5519_v12 }
  0x61   : > { %4502 = vmatmul.mubr.msk.f32.gmra.mrb[10].mxu1 %vm173_vm0, %v5227_v25  ;;  %4699 = vmatmul.mubr.msk.f32.gmra.mrb[24].mxu0 %vm173_vm0, %v5505_v7  ;;  %v5530_v7 = vld [vmem:[%s5125_s22 + $0x81] sm:$0xff] }
  0x62   : > { %4504 = vmatprep.mubr.msk.f32.mxu1 %vm173_vm0, %v5233_v27  ;;  %4701 = vmatprep.mubr.msk.f32.mxu0 %vm173_vm0, %v5508_v2  ;;  %v5535_v2 = vld [vmem:[%s5970_s1 + $0x40] sm:$0xff] }
  0x65   : > { %4505 = vmatmul.mubr.msk.f32.gmra.mrb[12].mxu1 %vm173_vm0, %v5247_v29  ;;  %4702 = vmatmul.mubr.msk.f32.gmra.mrb[26].mxu0 %vm173_vm0, %v5519_v12  ;;  %v5545_v12 = vld [vmem:[%s5125_s22 + $0x89] sm:$0xff] }
  0x66   : > { %4507 = vmatprep.mubr.msk.f32.mxu1 %vm173_vm0, %v5253_v31  ;;  %4706 = vmatprep.mubr.msk.f32.mxu0 %vm173_vm0, %v5168_v14  ;;  %v5550_v14 = vld [vmem:[%s5125_s22 + $0x91] sm:$0xff] }
  0x69   : > { %4508 = vmatmul.mubr.msk.f32.gmra.mrb[14].mxu1 %vm173_vm0, %v5267_v33  ;;  %4707 = vmatmul.mubr.msk.f32.vlgmr.msra.gmra.mrb[0].mxu0 %vm173_vm0, %v5184_v16 }
  0x6a   : > { %4749 = vmatpush3.msra.mxu0 %v5298_v40  ;;  %4510 = vmatprep.mubr.msk.f32.mxu1 %vm173_vm0, %v5530_v7  ;;  %v5562_v40 = vld [vmem:[%s5125_s22 + $0x99] sm:$0xff] }
  0x6b   : > { %4709 = vmatprep.mubr.msk.f32.mxu0 %vm173_vm0, %v5190_v18  ;;  %4792 = vmatprep.subr.mxu0 %v5535_v2  ;;  %v5565_v18 = vld [vmem:[%s5125_s22 + $0xa1] sm:$0xff] }
  0x6d   : > { %4511 = vmatmul.mubr.msk.f32.gmra.mrb[16].mxu1 %vm173_vm0, %v5545_v12  ;;  %4710 = vmatmul.mubr.msk.f32.gmra.mrb[2].mxu0 %vm173_vm0, %v5204_v20  ;;  %v5576_v20 = vld [vmem:[%s5125_s22 + $0xa9] sm:$0xff] }
  0x6e   : > { %4513 = vmatprep.mubr.msk.f32.mxu1 %vm173_vm0, %v5550_v14  ;;  %4712 = vmatprep.mubr.msk.f32.mxu0 %vm173_vm0, %v5210_v22  ;;  %v5579_v22 = vld [vmem:[%s5125_s22 + $0xb1] sm:$0xff] }
  0x71   : > { %4514 = vmatmul.mubr.msk.f32.gmra.mrb[18].mxu1 %vm173_vm0, %v5562_v40  ;;  %4713 = vmatmul.mubr.msk.f32.gmra.mrb[4].mxu0 %vm173_vm0, %v5224_v24  ;;  %v5590_v24 = vld [vmem:[%s5125_s22 + $0xb9] sm:$0xff] }
  0x72   : > { %4516 = vmatprep.mubr.msk.f32.mxu1 %vm173_vm0, %v5565_v18  ;;  %4715 = vmatprep.mubr.msk.f32.mxu0 %vm173_vm0, %v5230_v26  ;;  %v5593_v26 = vld [vmem:[%s5125_s22 + $0xc1] sm:$0xff] }
  0x73   : > { %6014 = vst [vmem:[#allocation21_spill] sm:$0xff] %v5593_v26 }
  0x75   : > { %4517 = vmatmul.mubr.msk.f32.gmra.mrb[20].mxu1 %vm173_vm0, %v5576_v20  ;;  %4716 = vmatmul.mubr.msk.f32.gmra.mrb[6].mxu0 %vm173_vm0, %v5244_v28  ;;  %v5604_v28 = vld [vmem:[%s5125_s22 + $0xc9] sm:$0xff] }
  0x76   : > { %4519 = vmatprep.mubr.msk.f32.mxu1 %vm173_vm0, %v5579_v22  ;;  %4718 = vmatprep.mubr.msk.f32.mxu0 %vm173_vm0, %v5250_v30  ;;  %v5607_v30 = vld [vmem:[%s5125_s22 + $0xd1] sm:$0xff] }
  0x79   : > { %4520 = vmatmul.mubr.msk.f32.gmra.mrb[22].mxu1 %vm173_vm0, %v5590_v24  ;;  %4719 = vmatmul.mubr.msk.f32.gmra.mrb[8].mxu0 %vm173_vm0, %v5264_v32  ;;  %v5618_v32 = vld [vmem:[%s5125_s22 + $0xd9] sm:$0xff] }
  0x7a   : > { %4522 = vmatprep.mubr.msk.f32.mxu1 %vm173_vm0, %v5593_v26  ;;  %4721 = vmatprep.mubr.msk.f32.mxu0 %vm173_vm0, %v5270_v34  ;;  %v894_v26 = vld [vmem:[%s5125_s22 + $0x2] sm:$0xff] }
  0x7d   : > { %4523 = vmatmul.mubr.msk.f32.gmra.mrb[24].mxu1 %vm173_vm0, %v5604_v28  ;;  %4722 = vmatmul.mubr.msk.f32.gmra.mrb[10].mxu0 %vm173_vm0, %v5284_v36  ;;  %v895_v36 = vld [vmem:[%s5125_s22 + $0xa] sm:$0xff] }
  0x7e   : > { %4525 = vmatprep.mubr.msk.f32.mxu1 %vm173_vm0, %v5607_v30  ;;  %4724 = vmatprep.mubr.msk.f32.mxu0 %vm173_vm0, %v5290_v38 }
  0x81   : > { %4526 = vmatmul.mubr.msk.f32.gmra.mrb[26].mxu1 %vm173_vm0, %v5618_v32  ;;  %4725 = vmatmul.mubr.msk.f32.gmra.mrb[12].mxu0 %vm173_vm0, %v5308_v41 }
  0x82   : > { %4530 = vmatprep.mubr.msk.f32.mxu1 %vm173_vm0, %v894_v26  ;;  %4727 = vmatprep.mubr.msk.f32.mxu0 %vm173_vm0, %v5316_v43  ;;  %v5663_v26 = vld [vmem:[%s5125_s22 + $0xe0] sm:$0xff] }
  0x85   : > { %4531 = vmatmul.mubr.msk.f32.vlgmr.msra.gmra.mrb[0].mxu1 %vm173_vm0, %v895_v36  ;;  %4728 = vmatmul.mubr.msk.f32.gmra.mrb[14].mxu0 %vm173_vm0, %v5331_v45  ;;  %v2532_v36 = vld [vmem:[%s5125_s22 + $0xf0] sm:$0xff] }
  0x86   : > { %4573 = vmatpush3.msra.mxu1 %v5437_v6  ;;  %4533 = vmatprep.mubr.msk.f32.mxu1 %vm173_vm0, %v5273_v35  ;;  %v5674_v35 = vld [vmem:[%s5125_s22 + $0xe8] sm:$0xff]  ;;  %v6028_v6 = vld [vmem:[#allocation11_spill] sm:$0xff] }
  0x87   : > { %4730 = vmatprep.mubr.msk.f32.mxu0 %vm173_vm0, %v5337_v47  ;;  %4836 = vmatprep.subr.mxu1 %v5109_v1 }
  0x89   : > { %4534 = vmatmul.mubr.msk.f32.gmra.mrb[2].mxu1 %vm173_vm0, %v5287_v37  ;;  %4731 = vmatmul.mubr.msk.f32.gmra.mrb[16].mxu0 %vm173_vm0, %v5351_v49  ;;  %v2533_v37 = vld [vmem:[%s5125_s22 + $0xf8] sm:$0xff] }
  0x8a   : > { %4536 = vmatprep.mubr.msk.f32.mxu1 %vm173_vm0, %v5293_v39  ;;  %4733 = vmatprep.mubr.msk.f32.mxu0 %vm173_vm0, %v5357_v51 }
  0x8d   : > { %4537 = vmatmul.mubr.msk.f32.gmra.mrb[4].mxu1 %vm173_vm0, %v5311_v42  ;;  %4734 = vmatmul.mubr.msk.f32.gmra.mrb[18].mxu0 %vm173_vm0, %v5371_v53 }
  0x8e   : > { %4539 = vmatprep.mubr.msk.f32.mxu1 %vm173_vm0, %v5319_v44  ;;  %4736 = vmatprep.mubr.msk.f32.mxu0 %vm173_vm0, %v5377_v55 }
  0x91   : > { %4540 = vmatmul.mubr.msk.f32.gmra.mrb[6].mxu1 %vm173_vm0, %v5334_v46  ;;  %4737 = vmatmul.mubr.msk.f32.gmra.mrb[20].mxu0 %vm173_vm0, %v5391_v57 }
  0x92   : > { %4542 = vmatprep.mubr.msk.f32.mxu1 %vm173_vm0, %v5340_v48  ;;  %4739 = vmatprep.mubr.msk.f32.mxu0 %vm173_vm0, %v5397_v59 }
  0x95   : > { %4543 = vmatmul.mubr.msk.f32.gmra.mrb[8].mxu1 %vm173_vm0, %v5354_v50  ;;  %4740 = vmatmul.mubr.msk.f32.gmra.mrb[22].mxu0 %vm173_vm0, %v5411_v61 }
  0x96   : > { %4545 = vmatprep.mubr.msk.f32.mxu1 %vm173_vm0, %v5360_v52  ;;  %4742 = vmatprep.mubr.msk.f32.mxu0 %vm173_vm0, %v5663_v26 }
  0x99   : > { %4546 = vmatmul.mubr.msk.f32.gmra.mrb[10].mxu1 %vm173_vm0, %v5374_v54  ;;  %4743 = vmatmul.mubr.msk.f32.gmra.mrb[24].mxu0 %vm173_vm0, %v5674_v35 }
  0x9a   : > { %4548 = vmatprep.mubr.msk.f32.mxu1 %vm173_vm0, %v5380_v56  ;;  %4745 = vmatprep.mubr.msk.f32.mxu0 %vm173_vm0, %v2532_v36  ;;  %v5794_v36 = vld [vmem:[%s5125_s22 + $0xe9] sm:$0xff] }
  0x9d   : > { %4549 = vmatmul.mubr.msk.f32.gmra.mrb[12].mxu1 %vm173_vm0, %v5394_v58  ;;  %4746 = vmatmul.mubr.msk.f32.gmra.mrb[26].mxu0 %vm173_vm0, %v2533_v37  ;;  %v2935_v37 = vld [vmem:[%s5125_s22 + $0xf1] sm:$0xff] }
  0x9e   : > { %4551 = vmatprep.mubr.msk.f32.mxu1 %vm173_vm0, %v5400_v60  ;;  %4750 = vmatprep.mubr.msk.f32.mxu0 %vm173_vm0, %v5142_v9  ;;  %v6015_v9 = vld [vmem:[#allocation15_spill] sm:$0xff] }
  0xa1   : > { %4552 = vmatmul.mubr.msk.f32.gmra.mrb[14].mxu1 %vm173_vm0, %v5414_v62  ;;  %4751 = vmatmul.mubr.msk.f32.vlgmr.msra.gmra.mrb[0].mxu0 %vm173_vm0, %v5161_v13  ;;  %v6016_v13 = vld [vmem:[#allocation16_spill] sm:$0xff] }
  0xa2   : > { %4793 = vmatpush3.msra.mxu0 %v5535_v2  ;;  %4554 = vmatprep.mubr.msk.f32.mxu1 %vm173_vm0, %v5418_v0  ;;  %v6029_v2 = vld [vmem:[#allocation12_spill] sm:$0xff] }
  0xa3   : > { %4753 = vmatprep.mubr.msk.f32.mxu0 %vm173_vm0, %v5171_v15  ;;  %v6017_v15 = vld [vmem:[#allocation17_spill] sm:$0xff] }
  0xa5   : > { %4555 = vmatmul.mubr.msk.f32.gmra.mrb[16].mxu1 %vm173_vm0, %v5429_v3  ;;  %4754 = vmatmul.mubr.msk.f32.gmra.mrb[2].mxu0 %vm173_vm0, %v5187_v17  ;;  %v6018_v17 = vld [vmem:[#allocation18_spill] sm:$0xff] }
  0xa6   : > { %4557 = vmatprep.mubr.msk.f32.mxu1 %vm173_vm0, %v5432_v4  ;;  %4756 = vmatprep.mubr.msk.f32.mxu0 %vm173_vm0, %v5193_v19  ;;  %v6019_v19 = vld [vmem:[#allocation3_spill] sm:$0xff] }
  0xa9   : > { %4558 = vmatmul.mubr.msk.f32.gmra.mrb[18].mxu1 %vm173_vm0, %v5446_v10  ;;  %4757 = vmatmul.mubr.msk.f32.gmra.mrb[4].mxu0 %vm173_vm0, %v5207_v21  ;;  %v6020_v21 = vld [vmem:[#allocation4_spill] sm:$0xff] }
  0xaa   : > { %4560 = vmatprep.mubr.msk.f32.mxu1 %vm173_vm0, %v5451_v63  ;;  %4759 = vmatprep.mubr.msk.f32.mxu0 %vm173_vm0, %v5213_v23  ;;  %v6021_v23 = vld [vmem:[#allocation5_spill] sm:$0xff] }
  0xad   : > { %4561 = vmatmul.mubr.msk.f32.gmra.mrb[20].mxu1 %vm173_vm0, %v5463_v5  ;;  %4760 = vmatmul.mubr.msk.f32.gmra.mrb[6].mxu0 %vm173_vm0, %v5227_v25  ;;  %v6022_v25 = vld [vmem:[#allocation6_spill] sm:$0xff] }
  0xae   : > { %4563 = vmatprep.mubr.msk.f32.mxu1 %vm173_vm0, %v5466_v11  ;;  %4762 = vmatprep.mubr.msk.f32.mxu0 %vm173_vm0, %v5233_v27  ;;  %v6024_v27 = vld [vmem:[#allocation8_spill] sm:$0xff] }
  0xb1   : > { %4564 = vmatmul.mubr.msk.f32.gmra.mrb[22].mxu1 %vm173_vm0, %v6015_v9  ;;  %4763 = vmatmul.mubr.msk.f32.gmra.mrb[8].mxu0 %vm173_vm0, %v5247_v29  ;;  %v6026_v29 = vld [vmem:[#allocation9_spill] sm:$0xff] }
  0xb2   : > { %4566 = vmatprep.mubr.msk.f32.mxu1 %vm173_vm0, %v6016_v13  ;;  %4765 = vmatprep.mubr.msk.f32.mxu0 %vm173_vm0, %v5253_v31  ;;  %v6027_v31 = vld [vmem:[#allocation10_spill] sm:$0xff] }
  0xb5   : > { %4567 = vmatmul.mubr.msk.f32.gmra.mrb[24].mxu1 %vm173_vm0, %v6017_v15  ;;  %4766 = vmatmul.mubr.msk.f32.gmra.mrb[10].mxu0 %vm173_vm0, %v5267_v33  ;;  %v5783_v33 = vld [vmem:[%s5125_s22 + $0xe1] sm:$0xff] }
  0xb6   : > { %4569 = vmatprep.mubr.msk.f32.mxu1 %vm173_vm0, %v5494_v8  ;;  %4768 = vmatprep.mubr.msk.f32.mxu0 %vm173_vm0, %v5530_v7 }
  0xb9   : > { %4570 = vmatmul.mubr.msk.f32.gmra.mrb[26].mxu1 %vm173_vm0, %v6018_v17  ;;  %4769 = vmatmul.mubr.msk.f32.gmra.mrb[12].mxu0 %vm173_vm0, %v5545_v12 }
  0xba   : > { %4574 = vmatprep.mubr.msk.f32.mxu1 %vm173_vm0, %v6019_v19  ;;  %4771 = vmatprep.mubr.msk.f32.mxu0 %vm173_vm0, %v5550_v14  ;;  %v6030_v19 = vld [vmem:[#allocation13_spill] sm:$0xff] }
  0xbd   : > { %4575 = vmatmul.mubr.msk.f32.vlgmr.msra.gmra.mrb[0].mxu1 %vm173_vm0, %v6020_v21  ;;  %4772 = vmatmul.mubr.msk.f32.gmra.mrb[14].mxu0 %vm173_vm0, %v5562_v40  ;;  %v2936_v21 = vld [vmem:[%s5125_s22 + $0xf9] sm:$0xff] }
  0xbe   : > { %4837 = vmatpush3.msra.mxu1 %v5109_v1  ;;  %4577 = vmatprep.mubr.msk.f32.mxu1 %vm173_vm0, %v6021_v23  ;;  %v6023_v1 = vld [vmem:[#allocation7_spill] sm:$0xff]  ;;  %v6031_v23 = vld [vmem:[#allocation14_spill] sm:$0xff] }
  0xbf   : > { %4774 = vmatprep.mubr.msk.f32.mxu0 %vm173_vm0, %v5565_v18 }
  0xc1   : > { %4578 = vmatmul.mubr.msk.f32.gmra.mrb[2].mxu1 %vm173_vm0, %v5184_v16  ;;  %4775 = vmatmul.mubr.msk.f32.gmra.mrb[16].mxu0 %vm173_vm0, %v5576_v20  ;;  %v6025_v16 = vld [vmem:[#allocation21_spill] sm:$0xff] }
  0xc2   : > { %4580 = vmatprep.mubr.msk.f32.mxu1 %vm173_vm0, %v6022_v25  ;;  %4777 = vmatprep.mubr.msk.f32.mxu0 %vm173_vm0, %v5579_v22 }
  0xc5   : > { %4581 = vmatmul.mubr.msk.f32.gmra.mrb[4].mxu1 %vm173_vm0, %v6023_v1  ;;  %4778 = vmatmul.mubr.msk.f32.gmra.mrb[18].mxu0 %vm173_vm0, %v5590_v24 }
  0xc6   : > { %4583 = vmatprep.mubr.msk.f32.mxu1 %vm173_vm0, %v6024_v27  ;;  %4780 = vmatprep.mubr.msk.f32.mxu0 %vm173_vm0, %v6025_v16 }
  0xc9   : > { %4584 = vmatmul.mubr.msk.f32.gmra.mrb[6].mxu1 %vm173_vm0, %v6026_v29  ;;  %4781 = vmatmul.mubr.msk.f32.gmra.mrb[20].mxu0 %vm173_vm0, %v5604_v28 }
  0xca   : > { %4586 = vmatprep.mubr.msk.f32.mxu1 %vm173_vm0, %v6027_v31  ;;  %4783 = vmatprep.mubr.msk.f32.mxu0 %vm173_vm0, %v5607_v30 }
  0xcd   : > { %4587 = vmatmul.mubr.msk.f32.gmra.mrb[8].mxu1 %vm173_vm0, %v6028_v6  ;;  %4784 = vmatmul.mubr.msk.f32.gmra.mrb[22].mxu0 %vm173_vm0, %v5618_v32 }
  0xce   : > { %4589 = vmatprep.mubr.msk.f32.mxu1 %vm173_vm0, %v6029_v2  ;;  %4786 = vmatprep.mubr.msk.f32.mxu0 %vm173_vm0, %v5783_v33 }
  0xd1   : > { %4590 = vmatmul.mubr.msk.f32.gmra.mrb[10].mxu1 %vm173_vm0, %v6030_v19  ;;  %4787 = vmatmul.mubr.msk.f32.gmra.mrb[24].mxu0 %vm173_vm0, %v5794_v36 }
  0xd2   : > { %4592 = vmatprep.mubr.msk.f32.mxu1 %vm173_vm0, %v5270_v34  ;;  %4789 = vmatprep.mubr.msk.f32.mxu0 %vm173_vm0, %v2935_v37 }
  0xd5   : > { %4593 = vmatmul.mubr.msk.f32.gmra.mrb[12].mxu1 %vm173_vm0, %v6031_v23  ;;  %4790 = vmatmul.mubr.msk.f32.gmra.mrb[26].mxu0 %vm173_vm0, %v2936_v21 }
  0xd6   : > { %4595 = vmatprep.mubr.msk.f32.mxu1 %vm173_vm0, %v5290_v38  ;;  %4794 = vmatprep.mubr.msk.f32.mxu0 %vm173_vm0, %v5293_v39 }
  0xd9   : > { %4596 = vmatmul.mubr.msk.f32.gmra.mrb[14].mxu1 %vm173_vm0, %v5308_v41  ;;  %4795 = vmatmul.mubr.msk.f32.vlgmr.msra.gmra.mrb[0].mxu0 %vm173_vm0, %v5311_v42 }
  0xda   : > { %4598 = vmatprep.mubr.msk.f32.mxu1 %vm173_vm0, %v5316_v43  ;;  %4797 = vmatprep.mubr.msk.f32.mxu0 %vm173_vm0, %v5319_v44 }
  0xdd   : > { %4599 = vmatmul.mubr.msk.f32.gmra.mrb[16].mxu1 %vm173_vm0, %v5331_v45  ;;  %4798 = vmatmul.mubr.msk.f32.gmra.mrb[2].mxu0 %vm173_vm0, %v5334_v46 }
  0xde   : > { %4601 = vmatprep.mubr.msk.f32.mxu1 %vm173_vm0, %v5337_v47  ;;  %4800 = vmatprep.mubr.msk.f32.mxu0 %vm173_vm0, %v5340_v48 }
  0xe1   : > { %4602 = vmatmul.mubr.msk.f32.gmra.mrb[18].mxu1 %vm173_vm0, %v5351_v49  ;;  %4801 = vmatmul.mubr.msk.f32.gmra.mrb[4].mxu0 %vm173_vm0, %v5354_v50 }
  0xe2   : > { %4604 = vmatprep.mubr.msk.f32.mxu1 %vm173_vm0, %v5357_v51  ;;  %4803 = vmatprep.mubr.msk.f32.mxu0 %vm173_vm0, %v5360_v52 }
  0xe5   : > { %4605 = vmatmul.mubr.msk.f32.gmra.mrb[20].mxu1 %vm173_vm0, %v5371_v53  ;;  %4804 = vmatmul.mubr.msk.f32.gmra.mrb[6].mxu0 %vm173_vm0, %v5374_v54 }
  0xe6   : > { %4607 = vmatprep.mubr.msk.f32.mxu1 %vm173_vm0, %v5377_v55  ;;  %4806 = vmatprep.mubr.msk.f32.mxu0 %vm173_vm0, %v5380_v56 }
  0xe9   : > { %4608 = vmatmul.mubr.msk.f32.gmra.mrb[22].mxu1 %vm173_vm0, %v5391_v57  ;;  %4807 = vmatmul.mubr.msk.f32.gmra.mrb[8].mxu0 %vm173_vm0, %v5394_v58 }
  0xea   : > { %4610 = vmatprep.mubr.msk.f32.mxu1 %vm173_vm0, %v5397_v59  ;;  %4809 = vmatprep.mubr.msk.f32.mxu0 %vm173_vm0, %v5400_v60 }
  0xed   : > { %4611 = vmatmul.mubr.msk.f32.gmra.mrb[24].mxu1 %vm173_vm0, %v5411_v61  ;;  %4810 = vmatmul.mubr.msk.f32.gmra.mrb[10].mxu0 %vm173_vm0, %v5414_v62 }
  0xee   : > { %4613 = vmatprep.mubr.msk.f32.mxu1 %vm173_vm0, %v5663_v26  ;;  %4812 = vmatprep.mubr.msk.f32.mxu0 %vm173_vm0, %v5418_v0 }
  0xf1   : > { %4614 = vmatmul.mubr.msk.f32.gmra.mrb[26].mxu1 %vm173_vm0, %v5674_v35  ;;  %4813 = vmatmul.mubr.msk.f32.gmra.mrb[12].mxu0 %vm173_vm0, %v5429_v3 }
  0xf2   : > { %4639 = vmatprep.mubr.msk.f32.mxu1 %vm173_vm0, %v5530_v7  ;;  %4815 = vmatprep.mubr.msk.f32.mxu0 %vm173_vm0, %v5432_v4 }
  0xf5   : > { %4640 = vmatmul.mubr.msk.f32.vlgmr.msra.gmra.mrb[14].mxu1 %vm173_vm0, %v5545_v12  ;;  %4816 = vmatmul.mubr.msk.f32.gmra.mrb[14].mxu0 %vm173_vm0, %v5446_v10  ;;  %v6032_v12 = vld [vmem:[#allocation19_spill] sm:$0xff] }
  0xf6   : > { %4642 = vmatprep.mubr.msk.f32.mxu1 %vm173_vm0, %v5550_v14  ;;  %4818 = vmatprep.mubr.msk.f32.mxu0 %vm173_vm0, %v5451_v63  ;;  %v3338_v14 = vld [vmem:[%s5125_s22 + $0xf2] sm:$0xff] }
  0xf9   : > { %4643 = vmatmul.mubr.msk.f32.gmra.mrb[16].mxu1 %vm173_vm0, %v5562_v40  ;;  %4819 = vmatmul.mubr.msk.f32.gmra.mrb[16].mxu0 %vm173_vm0, %v5463_v5 }
  0xfa   : > { %4645 = vmatprep.mubr.msk.f32.mxu1 %vm173_vm0, %v5565_v18  ;;  %4821 = vmatprep.mubr.msk.f32.mxu0 %vm173_vm0, %v5466_v11  ;;  %v6033_v18 = vld [vmem:[#allocation20_spill] sm:$0xff] }
  0xfd   : > { %4646 = vmatmul.mubr.msk.f32.gmra.mrb[18].mxu1 %vm173_vm0, %v5576_v20  ;;  %4822 = vmatmul.mubr.msk.f32.gmra.mrb[18].mxu0 %vm173_vm0, %v6015_v9 }
  0xfe   : > { %4648 = vmatprep.mubr.msk.f32.mxu1 %vm173_vm0, %v5579_v22  ;;  %4824 = vmatprep.mubr.msk.f32.mxu0 %vm173_vm0, %v6016_v13 }
 0x101   : > { %4649 = vmatmul.mubr.msk.f32.gmra.mrb[20].mxu1 %vm173_vm0, %v5590_v24  ;;  %4825 = vmatmul.mubr.msk.f32.gmra.mrb[20].mxu0 %vm173_vm0, %v6017_v15 }
 0x102   : > { %4651 = vmatprep.mubr.msk.f32.mxu1 %vm173_vm0, %v6025_v16  ;;  %4827 = vmatprep.mubr.msk.f32.mxu0 %vm173_vm0, %v5494_v8  ;;  %v3339_v8 = vld [vmem:[%s5125_s22 + $0xfa] sm:$0xff] }
 0x105   : > { %4652 = vmatmul.mubr.msk.f32.gmra.mrb[22].mxu1 %vm173_vm0, %v5604_v28  ;;  %4828 = vmatmul.mubr.msk.f32.gmra.mrb[22].mxu0 %vm173_vm0, %v6018_v17 }
 0x106   : > { %4654 = vmatprep.mubr.msk.f32.mxu1 %vm173_vm0, %v5607_v30  ;;  %4830 = vmatprep.mubr.msk.f32.mxu0 %vm173_vm0, %v6032_v12 }
 0x109   : > { %4655 = vmatmul.mubr.msk.f32.gmra.mrb[24].mxu1 %vm173_vm0, %v5618_v32  ;;  %4831 = vmatmul.mubr.msk.f32.gmra.mrb[24].mxu0 %vm173_vm0, %v6033_v18 }
 0x10a   : > { %4657 = vmatprep.mubr.msk.f32.mxu1 %vm173_vm0, %v5783_v33  ;;  %4833 = vmatprep.mubr.msk.f32.mxu0 %vm173_vm0, %v3338_v14 }
 0x10d   : > { %4658 = vmatmul.mubr.msk.f32.gmra.mrb[26].mxu1 %vm173_vm0, %v5794_v36  ;;  %4834 = vmatmul.mubr.msk.f32.gmra.mrb[26].mxu0 %vm173_vm0, %v3339_v8 }
 0x190   : > { %v4576_v20 = vpop.f32.mrb[0].mxu1 }
 0x191   : > { %v1477_v22 = vpop.f32.mrb[1].mxu1 }
 0x194   : > { %v4579_v24 = vpop.f32.mrb[2].mxu1 }
 0x195   : > { %v1487_v28 = vpop.f32.mrb[3].mxu1 }
 0x198   : > { %v4582_v30 = vpop.f32.mrb[4].mxu1 }
 0x199   : > { %v1497_v32 = vpop.f32.mrb[5].mxu1 }
 0x19c   : > { %v4585_v34 = vpop.f32.mrb[6].mxu1 }
 0x19d   : > { %v1507_v38 = vpop.f32.mrb[7].mxu1 }
 0x1a0   : > { %v4588_v39 = vpop.f32.mrb[8].mxu1 }
 0x1a1   : > { %v1517_v41 = vpop.f32.mrb[9].mxu1 }
 0x1a4   : > { %v5920_v42 = vpop.f32.mrb[10].mxu1 }
 0x1a5   : > { %v5922_v43 = vpop.f32.mrb[11].mxu1 }
 0x1a8   : > { %v5924_v44 = vpop.f32.mrb[12].mxu1 }
 0x1a9   : > { %v5926_v45 = vpop.f32.mrb[13].mxu1 }
 0x1ac   : > { %v4796_v46 = vpop.f32.mrb[0].mxu0 }
 0x1ad   : > { %v4838_v47 = vadd.f32 %v4796_v46, %v4576_v20  ;;  %v3492_v48 = vpop.f32.mrb[1].mxu0 }
 0x1ae   : > { %v4839_v49 = vadd.f32 %v3492_v48, %v1477_v22 }
 0x1af   : > { %vm3744_vm1 = vcmp.ge.f32.partialorder %v4838_v47, 0.0  ;;  %v3772_v50 = vmul.f32 0.01, %v4838_v47 }
 0x1b0   : > { %vm3743_vm2 = vcmp.ge.f32.partialorder %v4839_v49, 0.0  ;;  %v3771_v51 = vmul.f32 0.01, %v4839_v49  ;;  %v4799_v52 = vpop.f32.mrb[2].mxu0 }
 0x1b1   : > { %v3800_v53 = vsel %vm3744_vm1, %v4838_v47, %v3772_v50  ;;  %v4840_v54 = vadd.f32 %v4799_v52, %v4579_v24  ;;  %v3502_v55 = vpop.f32.mrb[3].mxu0 }
 0x1b2   : > { %3828 = vst [vmem:[%s5932_s8 + $0x8] sm:$0xff] %v3800_v53  ;;  %v3799_v56 = vsel %vm3743_vm2, %v4839_v49, %v3771_v51  ;;  %v4841_v57 = vadd.f32 %v3502_v55, %v1487_v28 }
 0x1b3   : > { %3827 = vst [vmem:[%s5932_s8] sm:$0xff] %v3799_v56  ;;  %vm3746_vm3 = vcmp.ge.f32.partialorder %v4840_v54, 0.0  ;;  %v3774_v58 = vmul.f32 0.01, %v4840_v54 }
 0x1b4   : > { %vm3745_vm4 = vcmp.ge.f32.partialorder %v4841_v57, 0.0  ;;  %v3773_v59 = vmul.f32 0.01, %v4841_v57  ;;  %v4802_v60 = vpop.f32.mrb[4].mxu0 }
 0x1b5   : > { %v3802_v61 = vsel %vm3746_vm3, %v4840_v54, %v3774_v58  ;;  %v4842_v62 = vadd.f32 %v4802_v60, %v4582_v30  ;;  %v3512_v0 = vpop.f32.mrb[5].mxu0 }
 0x1b6   : > { %3830 = vst [vmem:[%s5932_s8 + $0x18] sm:$0xff] %v3802_v61  ;;  %v3801_v3 = vsel %vm3745_vm4, %v4841_v57, %v3773_v59  ;;  %v4843_v4 = vadd.f32 %v3512_v0, %v1497_v32 }
 0x1b7   : > { %3829 = vst [vmem:[%s5932_s8 + $0x10] sm:$0xff] %v3801_v3  ;;  %vm3748_vm5 = vcmp.ge.f32.partialorder %v4842_v62, 0.0  ;;  %v3776_v10 = vmul.f32 0.01, %v4842_v62 }
 0x1b8   : > { %vm3747_vm6 = vcmp.ge.f32.partialorder %v4843_v4, 0.0  ;;  %v3775_v63 = vmul.f32 0.01, %v4843_v4  ;;  %v4805_v5 = vpop.f32.mrb[6].mxu0 }
 0x1b9   : > { %v3804_v11 = vsel %vm3748_vm5, %v4842_v62, %v3776_v10  ;;  %v4844_v7 = vadd.f32 %v4805_v5, %v4585_v34  ;;  %v3522_v40 = vpop.f32.mrb[7].mxu0 }
 0x1ba   : > { %3832 = vst [vmem:[%s5932_s8 + $0x28] sm:$0xff] %v3804_v11  ;;  %v3803_v26 = vsel %vm3747_vm6, %v4843_v4, %v3775_v63  ;;  %v4845_v35 = vadd.f32 %v3522_v40, %v1507_v38 }
 0x1bb   : > { %3831 = vst [vmem:[%s5932_s8 + $0x20] sm:$0xff] %v3803_v26  ;;  %vm3750_vm7 = vcmp.ge.f32.partialorder %v4844_v7, 0.0  ;;  %v3778_v9 = vmul.f32 0.01, %v4844_v7 }
 0x1bc   : > { %vm3749_vm8 = vcmp.ge.f32.partialorder %v4845_v35, 0.0  ;;  %v3777_v13 = vmul.f32 0.01, %v4845_v35  ;;  %v4808_v15 = vpop.f32.mrb[8].mxu0 }
 0x1bd   : > { %v3806_v17 = vsel %vm3750_vm7, %v4844_v7, %v3778_v9  ;;  %v4846_v25 = vadd.f32 %v4808_v15, %v4588_v39  ;;  %v3532_v1 = vpop.f32.mrb[9].mxu0 }
 0x1be   : > { %3834 = vst [vmem:[%s5932_s8 + $0x38] sm:$0xff] %v3806_v17  ;;  %v3805_v27 = vsel %vm3749_vm8, %v4845_v35, %v3777_v13  ;;  %v4847_v16 = vadd.f32 %v3532_v1, %v1517_v41 }
 0x1bf   : > { %3833 = vst [vmem:[%s5932_s8 + $0x30] sm:$0xff] %v3805_v27  ;;  %vm3752_vm9 = vcmp.ge.f32.partialorder %v4846_v25, 0.0  ;;  %v3780_v29 = vmul.f32 0.01, %v4846_v25 }
 0x1c0   : > { %vm3751_vm10 = vcmp.ge.f32.partialorder %v4847_v16, 0.0  ;;  %v3779_v31 = vmul.f32 0.01, %v4847_v16  ;;  %v4811_v33 = vpop.f32.mrb[10].mxu0 }
 0x1c1   : > { %v3808_v6 = vsel %vm3752_vm9, %v4846_v25, %v3780_v29  ;;  %v4848_v2 = vadd.f32 %v4811_v33, %v5920_v42  ;;  %v3542_v36 = vpop.f32.mrb[11].mxu0 }
 0x1c2   : > { %3836 = vst [vmem:[%s5932_s8 + $0x48] sm:$0xff] %v3808_v6  ;;  %v3807_v37 = vsel %vm3751_vm10, %v4847_v16, %v3779_v31  ;;  %v4849_v19 = vadd.f32 %v3542_v36, %v5922_v43 }
 0x1c3   : > { %3835 = vst [vmem:[%s5932_s8 + $0x40] sm:$0xff] %v3807_v37  ;;  %vm3754_vm11 = vcmp.ge.f32.partialorder %v4848_v2, 0.0  ;;  %v3782_v21 = vmul.f32 0.01, %v4848_v2 }
 0x1c4   : > { %vm3753_vm12 = vcmp.ge.f32.partialorder %v4849_v19, 0.0  ;;  %v3781_v23 = vmul.f32 0.01, %v4849_v19  ;;  %v4814_v12 = vpop.f32.mrb[12].mxu0 }
 0x1c5   : > { %v3810_v14 = vsel %vm3754_vm11, %v4848_v2, %v3782_v21  ;;  %v4850_v18 = vadd.f32 %v4814_v12, %v5924_v44  ;;  %v3552_v8 = vpop.f32.mrb[13].mxu0 }
 0x1c6   : > { %3838 = vst [vmem:[%s5932_s8 + $0x58] sm:$0xff] %v3810_v14  ;;  %v3809_v20 = vsel %vm3753_vm12, %v4849_v19, %v3781_v23  ;;  %v4851_v22 = vadd.f32 %v3552_v8, %v5926_v45 }
 0x1c7   : > { %3837 = vst [vmem:[%s5932_s8 + $0x50] sm:$0xff] %v3809_v20  ;;  %vm3756_vm13 = vcmp.ge.f32.partialorder %v4850_v18, 0.0  ;;  %v3784_v24 = vmul.f32 0.01, %v4850_v18 }
 0x1c8   : > { %vm3755_vm14 = vcmp.ge.f32.partialorder %v4851_v22, 0.0  ;;  %v3783_v28 = vmul.f32 0.01, %v4851_v22  ;;  %v4641_v30 = vpop.f32.mrb[14].mxu1  ;;  %v4817_v32 = vpop.f32.mrb[14].mxu0 }
 0x1c9   : > { %v3812_v34 = vsel %vm3756_vm13, %v4850_v18, %v3784_v24  ;;  %v4852_v38 = vadd.f32 %v4817_v32, %v4641_v30  ;;  %v1950_v39 = vpop.f32.mrb[15].mxu1  ;;  %v3562_v41 = vpop.f32.mrb[15].mxu0 }
 0x1ca   : > { %3840 = vst [vmem:[%s5932_s8 + $0x68] sm:$0xff] %v3812_v34  ;;  %v3811_v42 = vsel %vm3755_vm14, %v4851_v22, %v3783_v28  ;;  %v4853_v43 = vadd.f32 %v3562_v41, %v1950_v39 }
 0x1cb   : > { %3839 = vst [vmem:[%s5932_s8 + $0x60] sm:$0xff] %v3811_v42  ;;  %vm3758_vm15 = vcmp.ge.f32.partialorder %v4852_v38, 0.0  ;;  %v3786_v44 = vmul.f32 0.01, %v4852_v38 }
 0x1cc   : > { %vm3757_vm0 = vcmp.ge.f32.partialorder %v4853_v43, 0.0  ;;  %v3785_v45 = vmul.f32 0.01, %v4853_v43  ;;  %v4644_v46 = vpop.f32.mrb[16].mxu1  ;;  %v4820_v47 = vpop.f32.mrb[16].mxu0 }
 0x1cd   : > { %v3814_v48 = vsel %vm3758_vm15, %v4852_v38, %v3786_v44  ;;  %v4854_v49 = vadd.f32 %v4820_v47, %v4644_v46  ;;  %v1960_v50 = vpop.f32.mrb[17].mxu1  ;;  %v3572_v51 = vpop.f32.mrb[17].mxu0 }
 0x1ce   : > { %3842 = vst [vmem:[%s5932_s8 + $0x78] sm:$0xff] %v3814_v48  ;;  %v3813_v52 = vsel %vm3757_vm0, %v4853_v43, %v3785_v45  ;;  %v4855_v53 = vadd.f32 %v3572_v51, %v1960_v50 }
 0x1cf   : > { %3841 = vst [vmem:[%s5932_s8 + $0x70] sm:$0xff] %v3813_v52  ;;  %vm3760_vm1 = vcmp.ge.f32.partialorder %v4854_v49, 0.0  ;;  %v3788_v54 = vmul.f32 0.01, %v4854_v49 }
 0x1d0   : > { %vm3759_vm2 = vcmp.ge.f32.partialorder %v4855_v53, 0.0  ;;  %v3787_v55 = vmul.f32 0.01, %v4855_v53  ;;  %v4647_v56 = vpop.f32.mrb[18].mxu1  ;;  %v4823_v57 = vpop.f32.mrb[18].mxu0 }
 0x1d1   : > { %v3816_v58 = vsel %vm3760_vm1, %v4854_v49, %v3788_v54  ;;  %v4856_v59 = vadd.f32 %v4823_v57, %v4647_v56  ;;  %v1970_v60 = vpop.f32.mrb[19].mxu1  ;;  %v3582_v61 = vpop.f32.mrb[19].mxu0 }
 0x1d2   : > { %3844 = vst [vmem:[%s5932_s8 + $0x88] sm:$0xff] %v3816_v58  ;;  %v3815_v62 = vsel %vm3759_vm2, %v4855_v53, %v3787_v55  ;;  %v4857_v0 = vadd.f32 %v3582_v61, %v1970_v60 }
 0x1d3   : > { %3843 = vst [vmem:[%s5932_s8 + $0x80] sm:$0xff] %v3815_v62  ;;  %vm3762_vm3 = vcmp.ge.f32.partialorder %v4856_v59, 0.0  ;;  %v3790_v3 = vmul.f32 0.01, %v4856_v59 }
 0x1d4   : > { %vm3761_vm4 = vcmp.ge.f32.partialorder %v4857_v0, 0.0  ;;  %v3789_v4 = vmul.f32 0.01, %v4857_v0  ;;  %v4650_v10 = vpop.f32.mrb[20].mxu1  ;;  %v4826_v63 = vpop.f32.mrb[20].mxu0 }
 0x1d5   : > { %v3818_v5 = vsel %vm3762_vm3, %v4856_v59, %v3790_v3  ;;  %v4858_v11 = vadd.f32 %v4826_v63, %v4650_v10  ;;  %v1980_v7 = vpop.f32.mrb[21].mxu1  ;;  %v3592_v40 = vpop.f32.mrb[21].mxu0 }
 0x1d6   : > { %3846 = vst [vmem:[%s5932_s8 + $0x98] sm:$0xff] %v3818_v5  ;;  %v3817_v26 = vsel %vm3761_vm4, %v4857_v0, %v3789_v4  ;;  %v4859_v35 = vadd.f32 %v3592_v40, %v1980_v7 }
 0x1d7   : > { %3845 = vst [vmem:[%s5932_s8 + $0x90] sm:$0xff] %v3817_v26  ;;  %vm3764_vm5 = vcmp.ge.f32.partialorder %v4858_v11, 0.0  ;;  %v3792_v9 = vmul.f32 0.01, %v4858_v11 }
 0x1d8   : > { %vm3763_vm6 = vcmp.ge.f32.partialorder %v4859_v35, 0.0  ;;  %v3791_v13 = vmul.f32 0.01, %v4859_v35  ;;  %v4653_v15 = vpop.f32.mrb[22].mxu1  ;;  %v4829_v17 = vpop.f32.mrb[22].mxu0 }
 0x1d9   : > { %v3820_v25 = vsel %vm3764_vm5, %v4858_v11, %v3792_v9  ;;  %v4860_v1 = vadd.f32 %v4829_v17, %v4653_v15  ;;  %v1990_v27 = vpop.f32.mrb[23].mxu1  ;;  %v3602_v16 = vpop.f32.mrb[23].mxu0 }
 0x1da   : > { %3848 = vst [vmem:[%s5932_s8 + $0xa8] sm:$0xff] %v3820_v25  ;;  %v3819_v29 = vsel %vm3763_vm6, %v4859_v35, %v3791_v13  ;;  %v4861_v31 = vadd.f32 %v3602_v16, %v1990_v27 }
 0x1db   : > { %3847 = vst [vmem:[%s5932_s8 + $0xa0] sm:$0xff] %v3819_v29  ;;  %vm3766_vm7 = vcmp.ge.f32.partialorder %v4860_v1, 0.0  ;;  %v3794_v33 = vmul.f32 0.01, %v4860_v1 }
 0x1dc   : > { %vm3765_vm8 = vcmp.ge.f32.partialorder %v4861_v31, 0.0  ;;  %v3793_v6 = vmul.f32 0.01, %v4861_v31  ;;  %v4656_v2 = vpop.f32.mrb[24].mxu1  ;;  %v4832_v36 = vpop.f32.mrb[24].mxu0 }
 0x1dd   : > { %v3822_v37 = vsel %vm3766_vm7, %v4860_v1, %v3794_v33  ;;  %v4862_v19 = vadd.f32 %v4832_v36, %v4656_v2  ;;  %v2000_v21 = vpop.f32.mrb[25].mxu1  ;;  %v3612_v23 = vpop.f32.mrb[25].mxu0 }
 0x1de   : > { %3850 = vst [vmem:[%s5932_s8 + $0xb8] sm:$0xff] %v3822_v37  ;;  %v3821_v12 = vsel %vm3765_vm8, %v4861_v31, %v3793_v6  ;;  %v4863_v14 = vadd.f32 %v3612_v23, %v2000_v21 }
 0x1df   : > { %3849 = vst [vmem:[%s5932_s8 + $0xb0] sm:$0xff] %v3821_v12  ;;  %vm3768_vm9 = vcmp.ge.f32.partialorder %v4862_v19, 0.0  ;;  %v3796_v18 = vmul.f32 0.01, %v4862_v19 }
 0x1e0   : > { %vm3767_vm10 = vcmp.ge.f32.partialorder %v4863_v14, 0.0  ;;  %v3795_v8 = vmul.f32 0.01, %v4863_v14  ;;  %v4659_v20 = vpop.f32.mrb[26].mxu1  ;;  %v4835_v22 = vpop.f32.mrb[26].mxu0 }
 0x1e1   : > { %v3824_v24 = vsel %vm3768_vm9, %v4862_v19, %v3796_v18  ;;  %v4864_v28 = vadd.f32 %v4835_v22, %v4659_v20  ;;  %v2010_v30 = vpop.f32.mrb[27].mxu1  ;;  %v3622_v32 = vpop.f32.mrb[27].mxu0 }
 0x1e2   : > { %3852 = vst [vmem:[%s5932_s8 + $0xc8] sm:$0xff] %v3824_v24  ;;  %v3823_v34 = vsel %vm3767_vm10, %v4863_v14, %v3795_v8  ;;  %v4865_v38 = vadd.f32 %v3622_v32, %v2010_v30 }
 0x1e3   : > { %3851 = vst [vmem:[%s5932_s8 + $0xc0] sm:$0xff] %v3823_v34  ;;  %vm3770_vm11 = vcmp.ge.f32.partialorder %v4864_v28, 0.0  ;;  %v3798_v39 = vmul.f32 0.01, %v4864_v28 }
 0x1e4   : > { %vm3769_vm12 = vcmp.ge.f32.partialorder %v4865_v38, 0.0  ;;  %v3797_v41 = vmul.f32 0.01, %v4865_v38 }
 0x1e5   : > { %v3826_v42 = vsel %vm3770_vm11, %v4864_v28, %v3798_v39 }
 0x1e6   : > { %3854 = vst [vmem:[%s5932_s8 + $0xd8] sm:$0xff] %v3826_v42  ;;  %v3825_v43 = vsel %vm3769_vm12, %v4865_v38, %v3797_v41 }
 0x1e7   : > { %3853 = vst [vmem:[%s5932_s8 + $0xd0] sm:$0xff] %v3825_v43 }
 0x1e8 PF: > { %s12_s9 = sadd.s32 1, %s5078_s9  }
 0x1e9   : > { %p9_p4 = scmp.ge.s32.totalorder %s12_s9, 4  }
 0x1eb   :  { %11 = sbr.rel (!%p9_p4) target bundleno = 1 (0x1), region = 66 }

</bundles_post_ra>
